<compile_context>
chip_gen: v7x
topology: tpu7x:2x2x1
jax: 0.10.0
libtpu: 0.0.40
codegen_flags: <defaults>
</compile_context>

<pallas_src>
import jax
import jax.numpy as jnp
from jax.experimental import pallas as pl
from jax.experimental.pallas import tpu as pltpu


def _mlp_kernel_vec_out(x_ref, w1_ref, b1_ref, w2_ref, b2_ref, o_ref):
    """Fast path for n_output == 1.  w2 is a (1, H) row, b2 a (1, 1) SMEM scalar."""
    # Layer 1 on the MXU: (B, F) @ (F, H) with N = H = 128 (lane-dense result).
    h = jnp.dot(x_ref[...], w1_ref[...], preferred_element_type=jnp.float32)
    # Bias + ReLU on the VPU while the MXU result drains.
    h = jnp.maximum(h + b1_ref[...], 0.0)
    # Layer 2 (H -> 1): a (B,H)@(H,1) matmul would waste the MXU (N=1 pads to
    # a full lane group).  VPU multiply + XLU lane reduce instead.
    y = jnp.sum(h * w2_ref[...], axis=-1, keepdims=True)      # (B, 1)
    o_ref[...] = y + b2_ref[0, 0]                              # SMEM scalar bias


def _mlp_kernel_mat_out(x_ref, w1_ref, b1_ref, w2_ref, b2_ref, o_ref):
    """General n_output > 1 path: both layers on the MXU."""
    h = jnp.dot(x_ref[...], w1_ref[...], preferred_element_type=jnp.float32)
    h = jnp.maximum(h + b1_ref[...], 0.0)
    o_ref[...] = (
        jnp.dot(h, w2_ref[...], preferred_element_type=jnp.float32) + b2_ref[...]
    )


def net_forward(x, w1, b1, w2, b2):
    """x: (B, F) f32; w1: (F, H); b1: (1, H); w2: (H, O); b2: (1, O).

    Returns (B, O) f32 == relu(x @ w1 + b1) @ w2 + b2.
    """
    B, F = x.shape
    H, O = w2.shape
    b1 = b1.reshape(1, H)

    # Advisory cost hint so XLA does not over-serialize around the custom call.
    cost = pl.CostEstimate(
        flops=2 * B * (F * H + H * O),
        transcendentals=0,
        bytes_accessed=4 * (B * F + F * H + H + H * O + O + B * O),
    )

    vmem = pl.BlockSpec(memory_space=pltpu.VMEM)
    if O == 1:
        kernel = _mlp_kernel_vec_out
        w2_in = w2.reshape(1, H)          # row layout for the VPU broadcast
        b2_in = b2.reshape(1, 1)          # scalar bias lives in SMEM
        in_specs = [vmem, vmem, vmem, vmem,
                    pl.BlockSpec(memory_space=pltpu.SMEM)]
    else:
        kernel = _mlp_kernel_mat_out
        w2_in = w2
        b2_in = b2.reshape(1, O)
        in_specs = [vmem, vmem, vmem, vmem, vmem]

    return pl.pallas_call(
        kernel,
        out_shape=jax.ShapeDtypeStruct((B, O), jnp.float32),
        in_specs=in_specs,
        out_specs=vmem,
        cost_estimate=cost,
    )(x, w1, b1, w2_in, b2_in)


def init_params(key, n_feature, n_hidden, n_output):
    """Deterministic init mimicking torch.nn.Linear's U(-1/sqrt(fan_in), ...)."""
    k1, k2, k3, k4 = jax.random.split(key, 4)
    bound1 = 1.0 / jnp.sqrt(float(n_feature))
    bound2 = 1.0 / jnp.sqrt(float(n_hidden))
    w1 = jax.random.uniform(k1, (n_feature, n_hidden), jnp.float32, -bound1, bound1)
    b1 = jax.random.uniform(k2, (1, n_hidden), jnp.float32, -bound1, bound1)
    w2 = jax.random.uniform(k3, (n_hidden, n_output), jnp.float32, -bound2, bound2)
    b2 = jax.random.uniform(k4, (1, n_output), jnp.float32, -bound2, bound2)
    return w1, b1, w2, b2


if __name__ == "__main__":
    # Boston housing: 13 input features, 1 regression output.
    n_feature, n_hidden, n_output = 13, 128, 1
    batch = 8

    key = jax.random.PRNGKey(0)
    k_x, k_p = jax.random.split(key)
    x = jax.random.normal(k_x, (batch, n_feature), jnp.float32)
    w1, b1, w2, b2 = init_params(k_p, n_feature, n_hidden, n_output)

    out = jax.block_until_ready(net_forward(x, w1, b1, w2, b2))

    # Reference check against plain JAX (same math as the PyTorch forward).
    hi = jax.lax.Precision.HIGHEST
    h_ref = jnp.maximum(jnp.dot(x, w1, precision=hi) + b1, 0.0)
    ref = jnp.dot(h_ref, w2, precision=hi) + b2
    assert out.shape == (batch, n_output)
    assert jnp.allclose(out, ref, atol=1e-4, rtol=1e-4)

    print("KERNEL_OK")
</pallas_src>

<mosaic_0001>
module attributes {stable_mosaic.version = 11 : i64} {
  func.func @_mlp_kernel_vec_out(%arg0: memref<8x13xf32, #tpu.memory_space<vmem>>, %arg1: memref<13x128xf32, #tpu.memory_space<vmem>>, %arg2: memref<1x128xf32, #tpu.memory_space<vmem>>, %arg3: memref<1x128xf32, #tpu.memory_space<vmem>>, %arg4: memref<1x1xf32, #tpu.memory_space<smem>>, %arg5: memref<8x1xf32, #tpu.memory_space<vmem>>) attributes {dimension_semantics = [], scalar_prefetch = 0 : i64, scratch_operands = 0 : i64, tpu.core_type = #tpu.core_type<tc>} {
    %c0 = arith.constant 0 : index
    %c0_0 = arith.constant 0 : index
    %0 = vector.load %arg0[%c0, %c0_0] : memref<8x13xf32, #tpu.memory_space<vmem>>, vector<8x13xf32>
    %c0_1 = arith.constant 0 : index
    %c0_2 = arith.constant 0 : index
    %1 = vector.load %arg1[%c0_1, %c0_2] : memref<13x128xf32, #tpu.memory_space<vmem>>, vector<13x128xf32>
    %cst = arith.constant dense<0.000000e+00> : vector<8x128xf32>
    %2 = tpu.matmul %0, %1, %cst {dimension_numbers = #tpu.dot_dimension_numbers<[1], [0], [0], [1], [0, 0, 1, 1], [], []>} : vector<8x13xf32>, vector<13x128xf32>, vector<8x128xf32> -> vector<8x128xf32>
    %c0_3 = arith.constant 0 : index
    %c0_4 = arith.constant 0 : index
    %3 = vector.load %arg2[%c0_3, %c0_4] : memref<1x128xf32, #tpu.memory_space<vmem>>, vector<1x128xf32>
    %4 = vector.broadcast %3 : vector<1x128xf32> to vector<8x128xf32>
    %5 = arith.addf %2, %4 : vector<8x128xf32>
    %cst_5 = arith.constant 0.000000e+00 : f32
    %6 = vector.broadcast %cst_5 : f32 to vector<8x128xf32>
    %7 = arith.maximumf %5, %6 : vector<8x128xf32>
    %c0_6 = arith.constant 0 : index
    %c0_7 = arith.constant 0 : index
    %8 = vector.load %arg3[%c0_6, %c0_7] : memref<1x128xf32, #tpu.memory_space<vmem>>, vector<1x128xf32>
    %9 = vector.broadcast %8 : vector<1x128xf32> to vector<8x128xf32>
    %10 = arith.mulf %7, %9 : vector<8x128xf32>
    %cst_8 = arith.constant dense<0.000000e+00> : vector<8xf32>
    %11 = vector.multi_reduction <add>, %10, %cst_8 [1] : vector<8x128xf32> to vector<8xf32>
    %12 = vector.shape_cast %11 : vector<8xf32> to vector<8x1xf32>
    %c0_9 = arith.constant 0 : index
    %c0_10 = arith.constant 0 : index
    %13 = memref.load %arg4[%c0_9, %c0_10] : memref<1x1xf32, #tpu.memory_space<smem>>
    %14 = vector.broadcast %13 : f32 to vector<8x1xf32>
    %15 = arith.addf %12, %14 : vector<8x1xf32>
    %c0_11 = arith.constant 0 : index
    %c0_12 = arith.constant 0 : index
    %16 = vector.load %arg5[%c0_11, %c0_12] : memref<8x1xf32, #tpu.memory_space<vmem>>, vector<8x1xf32>
    tpu.vector_store %arg5[%c0_11, %c0_12], %15 {strides = array<i32>} : memref<8x1xf32, #tpu.memory_space<vmem>>, vector<8x1xf32>,
    return
  }
}

</mosaic_0001>

<bundles_post_ra>
// kernel: tpu_custom_call.1
= control target key start
LH: loop header
LB: loop body
LE: loop exit
PB: predicated region body
PF: predicated region fallthrough
CT: control target
= control target key end

     0   :  { %11 = vsyncpa [#allocation4], 0  ;;  %s312_s0 = inlined_call_operand.hbm [shape: f32[8,13], index: 0, kind: input, shape index: {}]   ;;  %s313_s1 = inlined_call_operand.hbm [shape: f32[13,128], index: 1, kind: input, shape index: {}]   ;;  %s314_s2 = inlined_call_operand.vmem [shape: f32[1,128], index: 2, kind: input, shape index: {}]   ;;  %s315_s3 = inlined_call_operand.vmem [shape: f32[1,128], index: 3, kind: input, shape index: {}]   ;;  %s316_s4 = inlined_call_operand.<no memory space> [shape: f32[1,1], index: 4, kind: input, shape index: {}]   ;;  %s317_s5 = inlined_call_operand.vmem [shape: f32[8,1], index: 5, kind: output, shape index: {}]  }
   0x1   :  { %12 = vsyncpa [#allocation6], 0  ;;  %s231_s18 = smov [#allocation3]   ;;  %s232_s20 = smov [#allocation5]  }
   0x2   :  { %s19_s19 = sshll.u32 %s231_s18, 4  ;;  %s28_s21 = sshll.u32 %s232_s20, 4  ;;  %s20_s19 = int_to_ptr.vmem [resolvable:$true] %s19_s19  ;;  %s269_s21 = int_to_ptr.vmem [resolvable:$true] %s28_s21 }
   0x3   :  { %s183_s24 = scalar_lea.hbm %s312_s0, 128 }
   0x4   :  { %p184_p0 = scmp.ne.s32.totalorder %s312_s0, %s183_s24  ;;  %p187_p1 = scmp.lt.u32.totalorder %s183_s24, %s312_s0 }
   0x6   :  { %p189_p2 = pnand %p187_p1, %p184_p0 }
   0x8   :  { %192 = shalt.err (!%p189_p2)
}
   0x9   :  { %s193_s29 = scalar_lea.vmem %s20_s19, 128  ;;  %p198_p4 = scmp.lt.s32.totalorder %s20_s19, %s20_s19 }
   0xa   :  { %p194_p3 = scmp.ne.s32.totalorder %s20_s19, %s193_s29  ;;  %p199_p5 = scmp.lt.s32.totalorder %s193_s29, %s193_s29 }
   0xc   :  { %p200_p6 = por %p199_p5, %p198_p4 }
   0xe   :  { %p201_p7 = pnand %p200_p6, %p194_p3 }
  0x10   :  { %204 = shalt.err (!%p201_p7)
}
  0x11   :  { %22 = dma.hbm_to_vmem [thread:$0]  %s312_s0, 128, %s20_s19, [#allocation4]  }
  0x12   :  { %s205_s9 = scalar_lea.hbm %s313_s1, 256 }
  0x13   :  { %p206_p8 = scmp.ne.s32.totalorder %s313_s1, %s205_s9  ;;  %p209_p9 = scmp.lt.u32.totalorder %s205_s9, %s313_s1 }
  0x15   :  { %p211_p10 = pnand %p209_p9, %p206_p8 }
  0x17   :  { %214 = shalt.err (!%p211_p10)
}
  0x18   :  { %s215_s14 = scalar_lea.vmem %s269_s21, 256  ;;  %p220_p12 = scmp.lt.s32.totalorder %s269_s21, %s269_s21 }
  0x19   :  { %p216_p11 = scmp.ne.s32.totalorder %s269_s21, %s215_s14  ;;  %p221_p13 = scmp.lt.s32.totalorder %s215_s14, %s215_s14 }
  0x1b   :  { %p222_p0 = por %p221_p13, %p220_p12 }
  0x1d   :  { %p223_p1 = pnand %p222_p0, %p216_p11 }
  0x1f   :  { %226 = shalt.err (!%p223_p1)
}
  0x20   :  { %s233_s0 = smov 128   ;;  %s234_s15 = smov 8  }
  0x21   :  { %34 = dma.hbm_to_vmem [thread:$0]  %s313_s1, 256, %s269_s21, [#allocation6], %s233_s0, %s233_s0, %s234_s15  }
  0x22   :  { %227 = dma.done.wait [#allocation4], 128  }
  0x23   :  { %228 = vsyncadd [#allocation4], 4294967168 }
  0x24   :  { %229 = dma.done.wait [#allocation6], 256  }
  0x25   :  { %230 = vsyncadd [#allocation6], 4294967040  ;;  %v235_v0 = vmov 0.0|0.0   ;;  %vm236_vm0 = vmmov 0   ;;  %v237_v1 = vmov 0.0   ;;  %vm61_vm1 = vcmask 1044480  }
  0x26   :  { %171 = vmatprep.subr.bf16.mxu0 %v235_v0  ;;  %168 = vmatprep.mubr.msk.f32.mxu0 %vm236_vm0, %v237_v1  ;;  %v48_v2 = vld [vmem:[#allocation5] sm:$0xff]  ;;  %v49_v3 = vld [vmem:[#allocation5 + $0x8] sm:$0x1f]  ;;  %vm238_vm2 = vmmov 1   ;;  %v47_v5 = vld [vmem:[#allocation3] sm:$0xff]  ;;  %vm57_vm4 = vcmask 105472   ;;  %v147_v13 = vstv %s316_s4 }
  0x27   :  { %vm173_vm3 = vmpackc.low %vm61_vm1, %vm238_vm2  ;;  %v172_v4 = vpack.c.bf16 %v49_v3, %v48_v2  ;;  %v157_v6 = vld [vmem:[%s314_s2] ss:$0 sm:$0xff]  ;;  %vm149_vm5 = vcmask 7168  }
  0x28   :  { %v160_v10 = vld [vmem:[%s315_s3] ss:$0 sm:$0xff] }
  0x29   :  { %174 = vmatpush3.bf16.msk.msra.mxu0 %vm173_vm3, %v172_v4 }
  0x2c   :  { %169 = vmatmul.mubr.msk.f32.vlgmr.msra.gmra.mrb[0].mxu0 %vm57_vm4, %v47_v5 }
  0xff   :  { %v131_v7 = vpop.f32.mrb[0].mxu0 }
 0x100   :  { %v132_v8 = vadd.f32 %v157_v6, %v131_v7  ;;  %v170_v9 = vpop.f32.mrb[1].mxu0 }
 0x102   :  { %v135_v11 = vmax.f32 %v132_v8, 0.0 }
 0x104   :  { %v143_v12 = vmul.f32 %v160_v10, %v135_v11 }
 0x106   :  { %144 = vadd.xlane.f32.xlu0 %v143_v12 }
 0x193   :  { %v145_v14 = vpop.xlane.xlu0 %144 }
 0x194   :  { %v148_v15 = vadd.f32 %v147_v13, %v145_v14 }
 0x196   :  { %150 = vst.msk [vmem:[%s317_s5] sm:$0xff] %vm149_vm5, %v148_v15 }
 0x197   :  { %155 = vsyncpa [#allocation4], 1 }
 0x198   :  { %156 = vsyncpa [#allocation6], 1 }

</bundles_post_ra>
